<compile_context>
chip_gen: v6e
topology: v6e:2x2x1
jax: 0.10.0
libtpu: 0.0.40
codegen_flags: <defaults>
</compile_context>

<pallas_src>
import functools

import jax
import jax.numpy as jnp
from jax import lax
from jax.experimental import pallas as pl
from jax.experimental.pallas import tpu as pltpu


def _out_conv_kernel(x_ref, w9_ref, w1_ref, shift_ref, b1_ref, o_ref,
                     *, H, W, C, NC):
    # x_ref     : (1, C, H*W)  f32   one batch element, channels on sublanes
    # w9_ref    : (C, 9*C)     bf16  3x3 weights (BN scale folded), K-packed
    #                                K index = (dy*3 + dx)*C + c_in
    # w1_ref    : (NC, C)      bf16  1x1 conv weights
    # shift_ref : (C, 1)       f32   folded BatchNorm shift
    # b1_ref    : (NC, 1)      f32   1x1 conv bias
    # o_ref     : (1, NC, H*W) f32
    HW = H * W
    x = x_ref[0]                                              # (C, HW) f32

    # ---- build the im2col slab in the lane (HW) dimension -------------------
    # w-coordinate of each lane, for masking the row boundaries of the +/-1
    # column shifts.
    w_idx = lax.broadcasted_iota(jnp.int32, (C, HW), 1) % W
    zc = jnp.zeros((C, 1), dtype=x.dtype)
    left = jnp.concatenate([zc, x[:, :HW - 1]], axis=1)        # value at (h, w-1)
    right = jnp.concatenate([x[:, 1:], zc], axis=1)            # value at (h, w+1)
    left = jnp.where(w_idx != 0, left, jnp.zeros_like(left))
    right = jnp.where(w_idx != W - 1, right, jnp.zeros_like(right))
    xw = jnp.concatenate([left, x, right], axis=0)             # (3C, HW), dx = 0,1,2

    zr = jnp.zeros((3 * C, W), dtype=x.dtype)
    up = jnp.concatenate([zr, xw[:, :HW - W]], axis=1)         # values from row h-1
    down = jnp.concatenate([xw[:, W:], zr], axis=1)            # values from row h+1
    col = jnp.concatenate([up, xw, down], axis=0)              # (9C, HW), (dy, dx, cin)

    # ---- 3x3 conv (BN scale already folded into w9) as ONE K=9C MXU matmul --
    acc = jnp.dot(w9_ref[...], col.astype(w9_ref.dtype),
                  preferred_element_type=jnp.float32)          # (C, HW) f32

    # ---- BatchNorm shift + ReLU (f32 VPU) ------------------------------------
    y = jnp.maximum(acc + shift_ref[...], 0.0)

    # ---- 1x1 conv + bias ------------------------------------------------------
    out = jnp.dot(w1_ref[...], y.astype(w1_ref.dtype),
                  preferred_element_type=jnp.float32) + b1_ref[...]   # (NC, HW)

    o_ref[...] = out.reshape(1, NC, HW)


def out_conv_pallas(x_nchw, w3, w1, b1, bn_gamma, bn_beta, bn_mean, bn_var,
                    eps=1e-5):
    """x_nchw: (B, C, H, W) float32. Returns (B, NC, H, W) float32."""
    B, C, H, W = x_nchw.shape
    NC = w1.shape[0]
    HW = H * W

    # Fold BatchNorm (inference) into per-output-channel scale/shift.
    scale = bn_gamma / jnp.sqrt(bn_var + eps)                  # (C,)
    shift = bn_beta - bn_mean * scale                          # (C,)

    # PyTorch conv weight (C_out, C_in, 3, 3) -> (C_out, 9*C_in) with
    # K index = (dy*3 + dx)*C_in + c_in; fold BN scale, cast to bf16.
    w9_t = (jnp.transpose(w3, (0, 2, 3, 1)).reshape(C, 9 * C)
            * scale[:, None]).astype(jnp.bfloat16)
    # 1x1 conv weight (NC, C, 1, 1) -> (NC, C) bf16; bias/shift as columns (f32).
    w1_t = w1.reshape(NC, C).astype(jnp.bfloat16)
    b1_col = b1.reshape(NC, 1).astype(jnp.float32)
    shift_col = shift.reshape(C, 1).astype(jnp.float32)

    # NCHW -> (B, C, H*W): a free metadata reshape (no transpose / pad HBM pass).
    x_r = x_nchw.reshape(B, C, HW)

    kernel = functools.partial(_out_conv_kernel, H=H, W=W, C=C, NC=NC)

    out = pl.pallas_call(
        kernel,
        out_shape=jax.ShapeDtypeStruct((B, NC, HW), jnp.float32),
        grid_spec=pltpu.PrefetchScalarGridSpec(
            num_scalar_prefetch=0,
            grid=(B,),
            in_specs=[
                pl.BlockSpec((1, C, HW), lambda b: (b, 0, 0)),
                pl.BlockSpec((C, 9 * C), lambda b: (0, 0)),
                pl.BlockSpec((NC, C), lambda b: (0, 0)),
                pl.BlockSpec((C, 1), lambda b: (0, 0)),
                pl.BlockSpec((NC, 1), lambda b: (0, 0)),
            ],
            out_specs=pl.BlockSpec((1, NC, HW), lambda b: (b, 0, 0)),
        ),
        compiler_params=pltpu.CompilerParams(
            dimension_semantics=("parallel",)),
    )(x_r, w9_t, w1_t, shift_col, b1_col)

    # (B, NC, H*W) -> (B, NC, H, W): free reshape, already NCHW order.
    return out.reshape(B, NC, H, W)


def out_conv_reference_f32(x_nchw, w3, w1, b1, bn_gamma, bn_beta, bn_mean,
                           bn_var, eps=1e-5):
    """Pure-f32 JAX reference of the PyTorch module (inference-mode BN)."""
    B, C, H, W = x_nchw.shape
    NC = w1.shape[0]
    xh = jnp.transpose(x_nchw, (0, 2, 3, 1))
    w3_hwio = jnp.transpose(w3, (2, 3, 1, 0))
    y = lax.conv_general_dilated(xh, w3_hwio, (1, 1), 'SAME',
                                 dimension_numbers=('NHWC', 'HWIO', 'NHWC'),
                                 precision=lax.Precision.HIGHEST)
    scale = bn_gamma / jnp.sqrt(bn_var + eps)
    y = jnp.maximum(y * scale + (bn_beta - bn_mean * scale), 0.0)
    out = jnp.einsum('bhwc,nc->bhwn', y, w1.reshape(NC, C),
                     precision=lax.Precision.HIGHEST) + b1
    return jnp.transpose(out, (0, 3, 1, 2))


def out_conv_reference_matched(x_nchw, w3, w1, b1, bn_gamma, bn_beta, bn_mean,
                               bn_var, eps=1e-5):
    """Pure-JAX reference with the SAME numerics as the Pallas kernel
    (BN scale folded into bf16 conv weights, bf16 MXU operands, f32 accum)."""
    B, C, H, W = x_nchw.shape
    NC = w1.shape[0]
    scale = bn_gamma / jnp.sqrt(bn_var + eps)
    shift = bn_beta - bn_mean * scale
    w3s = (w3 * scale[:, None, None, None]).astype(jnp.bfloat16)
    xh = jnp.transpose(x_nchw, (0, 2, 3, 1)).astype(jnp.bfloat16)
    w3_hwio = jnp.transpose(w3s, (2, 3, 1, 0))
    y = lax.conv_general_dilated(xh, w3_hwio, (1, 1), 'SAME',
                                 dimension_numbers=('NHWC', 'HWIO', 'NHWC'),
                                 preferred_element_type=jnp.float32)
    y = jnp.maximum(y + shift, 0.0)
    out = jnp.einsum('bhwc,nc->bhwn', y.astype(jnp.bfloat16),
                     w1.reshape(NC, C).astype(jnp.bfloat16),
                     preferred_element_type=jnp.float32) + b1
    return jnp.transpose(out, (0, 3, 1, 2))


if __name__ == "__main__":
    B, C, NC, H, W = 2, 8, 4, 16, 16
    key = jax.random.PRNGKey(0)
    k_x, k_w3, k_w1, k_b1, k_g = jax.random.split(key, 5)

    x = jax.random.normal(k_x, (B, C, H, W), dtype=jnp.float32)

    # Deterministic "kaiming-like" init (fan_in scaling), matching shapes of
    # the PyTorch module's parameters.
    fan3 = C * 3 * 3
    w3 = jax.random.normal(k_w3, (C, C, 3, 3), dtype=jnp.float32) * (2.0 / fan3) ** 0.5
    w1 = jax.random.normal(k_w1, (NC, C, 1, 1), dtype=jnp.float32) * (2.0 / C) ** 0.5
    b1 = jax.random.normal(k_b1, (NC,), dtype=jnp.float32) * 0.01

    # BatchNorm params: gamma ~ N(1, 0.02), beta = 0; running stats at defaults.
    bn_gamma = 1.0 + 0.02 * jax.random.normal(k_g, (C,), dtype=jnp.float32)
    bn_beta = jnp.zeros((C,), dtype=jnp.float32)
    bn_mean = jnp.zeros((C,), dtype=jnp.float32)
    bn_var = jnp.ones((C,), dtype=jnp.float32)

    out = out_conv_pallas(x, w3, w1, b1, bn_gamma, bn_beta, bn_mean, bn_var)
    out = jax.block_until_ready(out)
    assert out.shape == (B, NC, H, W)

    # Tight check vs. a reference with identical (bf16-operand / f32-accum)
    # numerics -- validates indexing, halo handling and output layout.
    ref_m = out_conv_reference_matched(x, w3, w1, b1, bn_gamma, bn_beta,
                                       bn_mean, bn_var)
    assert jnp.allclose(out, ref_m, atol=2e-2, rtol=2e-2), (
        float(jnp.max(jnp.abs(out - ref_m))))

    # Looser check vs. full-f32 PyTorch-semantics reference (bf16 MXU operands
    # introduce ~1e-2-level deviations).
    ref_f = out_conv_reference_f32(x, w3, w1, b1, bn_gamma, bn_beta,
                                   bn_mean, bn_var)
    assert jnp.allclose(out, ref_f, atol=1e-1, rtol=1e-1), (
        float(jnp.max(jnp.abs(out - ref_f))))

    print("KERNEL_OK")
</pallas_src>

<mosaic_0001>
module attributes {stable_mosaic.version = 11 : i64} {
  func.func @_out_conv_kernel(%arg0: i32, %arg1: memref<1x8x256xf32, #tpu.memory_space<vmem>>, %arg2: memref<8x72xbf16, #tpu.memory_space<vmem>>, %arg3: memref<4x8xbf16, #tpu.memory_space<vmem>>, %arg4: memref<8x1xf32, #tpu.memory_space<vmem>>, %arg5: memref<4x1xf32, #tpu.memory_space<vmem>>, %arg6: memref<1x4x256xf32, #tpu.memory_space<vmem>>) attributes {dimension_semantics = [#tpu.dimension_semantics<parallel>], iteration_bounds = array<i64: 2>, scalar_prefetch = 0 : i64, scratch_operands = 0 : i64, tpu.core_type = #tpu.core_type<tc>, window_params = [{transform_indices = @transform_0, window_bounds = array<i64: 1, 8, 256>}, {pipeline_mode = #tpu.pipeline_mode<synchronous>, transform_indices = @transform_1, window_bounds = array<i64: 8, 72>}, {pipeline_mode = #tpu.pipeline_mode<synchronous>, transform_indices = @transform_2, window_bounds = array<i64: 4, 8>}, {pipeline_mode = #tpu.pipeline_mode<synchronous>, transform_indices = @transform_3, window_bounds = array<i64: 8, 1>}, {pipeline_mode = #tpu.pipeline_mode<synchronous>, transform_indices = @transform_4, window_bounds = array<i64: 4, 1>}, {transform_indices = @transform_5, window_bounds = array<i64: 1, 4, 256>}]} {
    %c0 = arith.constant 0 : index
    %c0_0 = arith.constant 0 : index
    %c0_1 = arith.constant 0 : index
    %0 = vector.load %arg1[%c0, %c0_0, %c0_1] : memref<1x8x256xf32, #tpu.memory_space<vmem>>, vector<1x8x256xf32>
    %1 = vector.shape_cast %0 : vector<1x8x256xf32> to vector<8x256xf32>
    %2 = tpu.iota {dimensions = array<i32: 1>} : vector<8x256xi32>
    %c16_i32 = arith.constant 16 : i32
    %c0_i32 = arith.constant 0 : i32
    %3 = arith.cmpi eq, %c16_i32, %c0_i32 : i32
    %c1_i32 = arith.constant 1 : i32
    %4 = arith.select %3, %c1_i32, %c16_i32 : i32
    %5 = vector.broadcast %4 : i32 to vector<8x256xi32>
    %6 = arith.remsi %2, %5 : vector<8x256xi32>
    %c0_i32_2 = arith.constant 0 : i32
    %7 = vector.broadcast %c0_i32_2 : i32 to vector<8x256xi32>
    %8 = arith.cmpi ne, %6, %7 : vector<8x256xi32>
    %c0_i32_3 = arith.constant 0 : i32
    %9 = vector.broadcast %c0_i32_3 : i32 to vector<8x256xi32>
    %10 = arith.cmpi slt, %6, %9 : vector<8x256xi32>
    %c0_i32_4 = arith.constant 0 : i32
    %11 = arith.cmpi slt, %4, %c0_i32_4 : i32
    %12 = vector.broadcast %11 : i1 to vector<8x256xi1>
    %13 = vector.broadcast %12 : vector<8x256xi1> to vector<8x256xi1>
    %14 = arith.xori %10, %13 : vector<8x256xi1>
    %15 = arith.andi %14, %8 : vector<8x256xi1>
    %16 = vector.broadcast %4 : i32 to vector<8x256xi32>
    %17 = arith.addi %6, %16 : vector<8x256xi32>
    %18 = arith.select %15, %17, %6 : vector<8x256xi1>, vector<8x256xi32>
    %cst = arith.constant 0.000000e+00 : f32
    %19 = vector.broadcast %cst : f32 to vector<8x1xf32>
    %20 = vector.extract_strided_slice %1 {offsets = [0, 0], sizes = [8, 255], strides = [1, 1]} : vector<8x256xf32> to vector<8x255xf32>
    %21 = tpu.concatenate %19, %20 in 1 : vector<8x1xf32>, vector<8x255xf32> -> vector<8x256xf32>
    %22 = vector.extract_strided_slice %1 {offsets = [0, 1], sizes = [8, 255], strides = [1, 1]} : vector<8x256xf32> to vector<8x255xf32>
    %23 = tpu.concatenate %22, %19 in 1 : vector<8x255xf32>, vector<8x1xf32> -> vector<8x256xf32>
    %c0_i32_5 = arith.constant 0 : i32
    %24 = vector.broadcast %c0_i32_5 : i32 to vector<8x256xi32>
    %25 = arith.cmpi ne, %18, %24 : vector<8x256xi32>
    %cst_6 = arith.constant 0.000000e+00 : f32
    %26 = vector.broadcast %cst_6 : f32 to vector<8x256xf32>
    %27 = arith.select %25, %21, %26 : vector<8x256xi1>, vector<8x256xf32>
    %c15_i32 = arith.constant 15 : i32
    %28 = vector.broadcast %c15_i32 : i32 to vector<8x256xi32>
    %29 = arith.cmpi ne, %18, %28 : vector<8x256xi32>
    %cst_7 = arith.constant 0.000000e+00 : f32
    %30 = vector.broadcast %cst_7 : f32 to vector<8x256xf32>
    %31 = arith.select %29, %23, %30 : vector<8x256xi1>, vector<8x256xf32>
    %32 = tpu.concatenate %27, %1, %31 in 0 : vector<8x256xf32>, vector<8x256xf32>, vector<8x256xf32> -> vector<24x256xf32>
    %cst_8 = arith.constant 0.000000e+00 : f32
    %33 = vector.broadcast %cst_8 : f32 to vector<24x16xf32>
    %34 = vector.extract_strided_slice %32 {offsets = [0, 0], sizes = [24, 240], strides = [1, 1]} : vector<24x256xf32> to vector<24x240xf32>
    %35 = tpu.concatenate %33, %34 in 1 : vector<24x16xf32>, vector<24x240xf32> -> vector<24x256xf32>
    %36 = vector.extract_strided_slice %32 {offsets = [0, 16], sizes = [24, 240], strides = [1, 1]} : vector<24x256xf32> to vector<24x240xf32>
    %37 = tpu.concatenate %36, %33 in 1 : vector<24x240xf32>, vector<24x16xf32> -> vector<24x256xf32>
    %38 = tpu.concatenate %35, %32, %37 in 0 : vector<24x256xf32>, vector<24x256xf32>, vector<24x256xf32> -> vector<72x256xf32>
    %c0_9 = arith.constant 0 : index
    %c0_10 = arith.constant 0 : index
    %39 = vector.load %arg2[%c0_9, %c0_10] : memref<8x72xbf16, #tpu.memory_space<vmem>>, vector<8x72xbf16>
    %40 = arith.truncf %38 : vector<72x256xf32> to vector<72x256xbf16>
    %cst_11 = arith.constant dense<0.000000e+00> : vector<8x256xf32>
    %41 = tpu.matmul %39, %40, %cst_11 {dimension_numbers = #tpu.dot_dimension_numbers<[1], [0], [0], [1], [0, 0, 1, 1], [], []>} : vector<8x72xbf16>, vector<72x256xbf16>, vector<8x256xf32> -> vector<8x256xf32>
    %c0_12 = arith.constant 0 : index
    %c0_13 = arith.constant 0 : index
    %42 = vector.load %arg4[%c0_12, %c0_13] : memref<8x1xf32, #tpu.memory_space<vmem>>, vector<8x1xf32>
    %43 = vector.broadcast %42 : vector<8x1xf32> to vector<8x256xf32>
    %44 = arith.addf %41, %43 : vector<8x256xf32>
    %cst_14 = arith.constant 0.000000e+00 : f32
    %45 = vector.broadcast %cst_14 : f32 to vector<8x256xf32>
    %46 = arith.maximumf %44, %45 : vector<8x256xf32>
    %c0_15 = arith.constant 0 : index
    %c0_16 = arith.constant 0 : index
    %47 = vector.load %arg3[%c0_15, %c0_16] : memref<4x8xbf16, #tpu.memory_space<vmem>>, vector<4x8xbf16>
    %48 = arith.truncf %46 : vector<8x256xf32> to vector<8x256xbf16>
    %cst_17 = arith.constant dense<0.000000e+00> : vector<4x256xf32>
    %49 = tpu.matmul %47, %48, %cst_17 {dimension_numbers = #tpu.dot_dimension_numbers<[1], [0], [0], [1], [0, 0, 1, 1], [], []>} : vector<4x8xbf16>, vector<8x256xbf16>, vector<4x256xf32> -> vector<4x256xf32>
    %c0_18 = arith.constant 0 : index
    %c0_19 = arith.constant 0 : index
    %50 = vector.load %arg5[%c0_18, %c0_19] : memref<4x1xf32, #tpu.memory_space<vmem>>, vector<4x1xf32>
    %51 = vector.broadcast %50 : vector<4x1xf32> to vector<4x256xf32>
    %52 = arith.addf %49, %51 : vector<4x256xf32>
    %53 = vector.shape_cast %52 : vector<4x256xf32> to vector<1x4x256xf32>
    %c0_20 = arith.constant 0 : index
    %c0_21 = arith.constant 0 : index
    %c0_22 = arith.constant 0 : index
    %54 = vector.load %arg6[%c0_20, %c0_21, %c0_22] : memref<1x4x256xf32, #tpu.memory_space<vmem>>, vector<1x4x256xf32>
    tpu.vector_store %arg6[%c0_20, %c0_21, %c0_22], %53 {strides = array<i32>} : memref<1x4x256xf32, #tpu.memory_space<vmem>>, vector<1x4x256xf32>,
    return
  }
  func.func @transform_0(%arg0: i32) -> (i32, i32, i32) {
    %c0_i32 = arith.constant 0 : i32
    %c0_i32_0 = arith.constant 0 : i32
    %c0_i32_1 = arith.constant 0 : i32
    return %arg0, %c0_i32, %c0_i32_0 : i32, i32, i32
  }
  func.func @transform_1(%arg0: i32) -> (i32, i32) {
    %c0_i32 = arith.constant 0 : i32
    %c0_i32_0 = arith.constant 0 : i32
    %c0_i32_1 = arith.constant 0 : i32
    return %c0_i32, %c0_i32_0 : i32, i32
  }
  func.func @transform_2(%arg0: i32) -> (i32, i32) {
    %c0_i32 = arith.constant 0 : i32
    %c0_i32_0 = arith.constant 0 : i32
    %c0_i32_1 = arith.constant 0 : i32
    return %c0_i32, %c0_i32_0 : i32, i32
  }
  func.func @transform_3(%arg0: i32) -> (i32, i32) {
    %c0_i32 = arith.constant 0 : i32
    %c0_i32_0 = arith.constant 0 : i32
    %c0_i32_1 = arith.constant 0 : i32
    return %c0_i32, %c0_i32_0 : i32, i32
  }
  func.func @transform_4(%arg0: i32) -> (i32, i32) {
    %c0_i32 = arith.constant 0 : i32
    %c0_i32_0 = arith.constant 0 : i32
    %c0_i32_1 = arith.constant 0 : i32
    return %c0_i32, %c0_i32_0 : i32, i32
  }
  func.func @transform_5(%arg0: i32) -> (i32, i32, i32) {
    %c0_i32 = arith.constant 0 : i32
    %c0_i32_0 = arith.constant 0 : i32
    %c0_i32_1 = arith.constant 0 : i32
    return %arg0, %c0_i32, %c0_i32_0 : i32, i32, i32
  }
}

</mosaic_0001>

<bundles_post_ra>
// kernel: tpu_custom_call.1
= control target key start
LH: loop header
LB: loop body
LE: loop exit
PB: predicated region body
PF: predicated region fallthrough
CT: control target
= control target key end

     0   :  { %10 = vsyncpa [#allocation3], 0  ;;  %s1071_s0 = inlined_call_operand.hbm [shape: f32[2,8,256], index: 0, kind: input, shape index: {}]   ;;  %s1072_s1 = inlined_call_operand.vmem [shape: bf16[8,72], index: 1, kind: input, shape index: {}]   ;;  %s1073_s2 = inlined_call_operand.vmem [shape: bf16[4,8], index: 2, kind: input, shape index: {}]   ;;  %s1074_s3 = inlined_call_operand.vmem [shape: f32[8,1], index: 3, kind: input, shape index: {}]   ;;  %s1075_s4 = inlined_call_operand.vmem [shape: f32[4,1], index: 4, kind: input, shape index: {}]   ;;  %s1076_s5 = inlined_call_operand.hbm [shape: f32[2,4,256], index: 5, kind: output, shape index: {}]  }
   0x1   :  { %12 = vsyncpa [#allocation3 + $0x1], 0 }
   0x2   :  { %13 = vsyncpa [#allocation4], 0 }
   0x3   :  { %15 = vsyncpa [#allocation4 + $0x1], 0  ;;  %s841_s18 = smov 0   ;;  %s843_s19 = smov 0  }
   0x4   :  { %s845_s20 = smov 0   ;;  %s847_s21 = smov 0  }
   0x5 LB: > { %s862_s22 = sadd.s32 4294967295, %s801_s21   ;;  %s574_s23 = sadd.s32 4294967294, %s801_s21   ;;  %s801_s21 = sphi %s847_s21, %s1101_s21   ;;  %s797_s20 = sphi %s845_s20, %s1100_s20   ;;  %s793_s19 = sphi %s843_s19, %s1099_s19   ;;  %s789_s18 = sphi %s841_s18, %s1098_s18  }
   0x6   : > { %s866_s24 = sadd.s32 1, %s801_s21   ;;  %s28_s25 = sadd.s32 1, %s797_s20 }
   0x7   : > { %s25_s26 = ssub.s32 %s801_s21, %s866_s24  ;;  %p35_p0 = scmp.ne.s32.totalorder %s797_s20, %s793_s19 }
   0x8   : > { %p26_p1 = scmp.eq.s32.totalorder %s25_s26, 0  ;;  %p36_p2 = scmp.eq.s32.totalorder %s801_s21, 0 }
   0x9   : > { %p41_p3 = scmp.ne.s32.totalorder %s793_s19, %s789_s18  ;;  %p42_p4 = scmp.eq.s32.totalorder %s862_s22, 0 }
   0xa   : > { %s878_s27 = scalar_select %p26_p1, %s797_s20, %s28_s25  }
   0xb   : > { %p880_p5 = por %p36_p2, %p35_p0  ;;  %p884_p6 = por %p42_p4, %p41_p3 }
   0xc   : > { %p149_p7 = scmp.eq.s32.totalorder %s862_s22, 1  ;;  %p155_p8 = scmp.eq.s32.totalorder %s574_s23, 1 }
   0xd   : > { %s1080_s29 = scalar_select %p884_p6, 1, 0 }
   0xe   : > { %p627_p10 = scmp.lt.s32.totalorder %s801_s21, 2  ;;  %p891_p11 = por %p149_p7, %p35_p0 }
   0xf   : > { %p895_p12 = por %p155_p8, %p41_p3  ;;  %s187_s7 = sand.u32 1, %s797_s20  }
  0x10   : > { %s1081_s30 = scalar_select %p891_p11, 1, 0 }
  0x11   : > { %s1082_s6 = scalar_select %p895_p12, 1, 0 }
  0x12   : > { %s613_s8 = sshll.u32 %s801_s21, 8  ;;  %s577_s9 = sshll.u32 %s187_s7, 4 }
  0x13   : > { %s904_s12 = scalar_lea.hbm %s1071_s0, %s613_s8  ;;  %s191_s13 = scalar_lea.vmem [#allocation2], %s577_s9 }
  0x14   : > { %s199_s14 = sshll.u32 %s191_s13, 4  ;;  %p908_p13 = pnand %p627_p10, %p880_p5  ;;  %s912_s14 = int_to_ptr.vmem [resolvable:$true] %s199_s14 }
  0x15   : > { %s188_s16 = scalar_lea.sflag [#allocation3], %s187_s7  ;;  %s709_s17 = scalar_lea.hbm %s904_s12, 256 }
  0x16   : > { %p710_p2 = scmp.ne.s32.totalorder %s904_s12, %s709_s17  ;;  %p711_p3 = pneg %p908_p13 }
  0x17   : > { %s714_s26 = scalar_lea.hbm %s1071_s0, 512  ;;  %p715_p5 = scmp.lt.s32.totalorder %s904_s12, %s1071_s0 }
  0x18   : > { %p712_p4 = pnand %p711_p3, %p710_p2  ;;  %p716_p8 = scmp.lt.s32.totalorder %s714_s26, %s709_s17 }
  0x1a   : > { %p713_p7 = pneg %p712_p4  ;;  %p717_p10 = por %p716_p8, %p715_p5 }
  0x1c   : > { %p718_p9 = pnand %p717_p10, %p713_p7 }
  0x1e   : > { %721 = shalt.err (!%p718_p9)
}
  0x1f   : > { %s722_s7 = scalar_lea.vmem %s912_s14, 256  ;;  %s803_s9 = smov [#allocation2]  }
  0x20   : > { %p723_p0 = scmp.ne.s32.totalorder %s912_s14, %s722_s7  ;;  %s727_s10 = sshll.u32 %s803_s9, 4  ;;  %s728_s10 = int_to_ptr.vmem [resolvable:$false] %s727_s10 }
  0x21   : > { %s729_s11 = scalar_lea.vmem %s728_s10, 512  ;;  %p730_p4 = scmp.lt.s32.totalorder %s912_s14, %s728_s10 }
  0x22   : > { %p725_p1 = pnand %p723_p0, %p711_p3  ;;  %p731_p12 = scmp.lt.s32.totalorder %s729_s11, %s722_s7 }
  0x24   : > { %p726_p2 = pneg %p725_p1  ;;  %p732_p11 = por %p731_p12, %p730_p4 }
  0x26   : > { %p733_p6 = pnand %p732_p11, %p726_p2 }
  0x28   : > { %736 = shalt.err (!%p733_p6)
}
  0x29   : > { %622 = dma.hbm_to_vmem [thread:$0]  (!%p908_p13), %s904_s12, 256, %s912_s14, %s188_s16  }
  0x2a   : > { %p1084_p9 = scmp.lt.s32.totalorder %s801_s21, 3  ;;  %p1085_p7 = scmp.ge.s32.totalorder %s801_s21, 1 }
  0x2c   : > { %p205_p0 = pnand %p1085_p7, %p1084_p9 }
  0x2d   : > { %s939_s13 = sand.u32 (!%p205_p0), 1, %s793_s19   ;;  %p1086_p6 = scmp.ne.s32.totalorder (!%p205_p0), %s1080_s29, 0 }
  0x2e   : > { %208 = sbr.rel (%p205_p0) target bundleno = 733 (0x2dd), region = 40  ;;  %s581_s17 = sshll.u32 (!%p205_p0), %s939_s13, 4 }
  0x2f   : > { %s211_s23 = scalar_lea.sflag (!%p205_p0), [#allocation3], %s939_s13  ;;  %s214_s25 = scalar_lea.vmem (!%p205_p0), [#allocation2], %s581_s17 }
  0x33   : > { %780 = dma.done.wait (%p1086_p6), %s211_s23, 256  }
  0x34   : > { %782 = vsyncadd (%p1086_p6), %s211_s23, 4294967040  ;;  %v947_v0 = vld [vmem:[%s214_s25] sm:$0xff]  ;;  %v949_v1 = vld [vmem:[%s214_s25 + $0x8] sm:$0xff]  ;;  %s804_s12 = smov 127   ;;  %s805_s14 = smov 1   ;;  %v244_v3 = vlaneseq  ;;  %vm286_vm0 = vcmask 1039360  }
  0x35   : > { %v667_v2 = vpack.i.bf16 %v949_v1, %v947_v0  ;;  %s806_s15 = smov 112   ;;  %vm277_vm3 = vcmask 7168   ;;  %s807_s29 = smov 16   ;;  %v808_v28 = vmov 0   ;;  %v364_v29 = vld [vmem:[%s1074_s3] sm:$0xff]  ;;  %vm340_vm6 = vcmask 916480  }
  0x36   : > { %v245_v4 = vand.u32 127, %v244_v3  ;;  %413 = vmatprep.mubr.bf16.mxu0 %v808_v28  ;;  %707 = vset.pattern.permute.xlu0 %v808_v28  ;;  %vm374_vm7 = vcmask 1043456   ;;  %vm584_vm8 = vmpackc.low %vm340_vm6, %vm340_vm6  ;;  %vm809_vm9 = vmmov 1   ;;  %vm315_vm11 = vcmask 130048   ;;  %v427_v3 = vld [vmem:[%s1075_s4] sm:$0xf] }
  0x37   : > { %668 = vrot.lane.b32.xlu0 %v667_v2, %s804_s12  ;;  %475 = vmatprep.mubr.bf16.mxu1 %v808_v28  ;;  %vm596_vm14 = vmneg %vm315_vm11  ;;  %s582_s17 = sshll.u32 %s939_s13, 3  ;;  %s614_s23 = sshll.u32 %s862_s22, 7 }
  0x38   : > { %v246_v5 = vadd.s32 128, %v245_v4  ;;  %v251_v6 = vand.u32 15, %v245_v4  ;;  %708 = vset.pattern.permute.xlu1 %v808_v28  ;;  %s240_s25 = scalar_lea.vmem [#allocation5], %s582_s17  ;;  %s490_s16 = scalar_lea.sflag [#allocation4], %s939_s13 }
  0x39   : > { %s504_s12 = sshll.u32 %s240_s25, 4  ;;  %p1095_p12 = scmp.ne.s32.totalorder %s1081_s30, 0  ;;  %s505_s12 = int_to_ptr.vmem [resolvable:$true] %s504_s12 }
  0x3a   : > { %v258_v7 = vand.u32 15, %v246_v5  ;;  %vm953_vm1 = vcmp.ne.s32.totalorder %v251_v6, 15  ;;  %vm965_vm4 = vcmp.ne.s32.totalorder %v251_v6, 0  ;;  %s737_s26 = scalar_lea.vmem %s505_s12, 128  ;;  %s810_s22 = smov [#allocation5]  }
  0x3b   : > { %673 = vrot.lane.b32.xlu0 %v667_v2, %s805_s14  ;;  %vm590_vm12 = vmpackc.low %vm953_vm1, %vm809_vm9  ;;  %p738_p11 = scmp.ne.s32.totalorder %s505_s12, %s737_s26  ;;  %s741_s28 = sshll.u32 %s810_s22, 4  ;;  %s742_s28 = int_to_ptr.vmem [resolvable:$false] %s741_s28 }
  0x3c   : > { %vm957_vm2 = vcmp.ne.s32.totalorder %v258_v7, 15  ;;  %vm975_vm5 = vcmp.ne.s32.totalorder %v258_v7, 0  ;;  %vm597_vm15 = vmpackc.low %vm965_vm4, %vm596_vm14  ;;  %s743_s8 = scalar_lea.vmem %s742_s28, 256  ;;  %p744_p3 = scmp.lt.s32.totalorder %s505_s12, %s742_s28 }
  0x3d   : > { %vm587_vm10 = vmpackc.low %vm957_vm2, %vm809_vm9  ;;  %p739_p13 = pnand %p738_p11, %p1095_p12  ;;  %p745_p5 = scmp.lt.s32.totalorder %s743_s8, %s737_s26 }
  0x3e   : > { %vm593_vm13 = vmpackc.low %vm975_vm5, %vm809_vm9 }
  0x3f   : > { %688 = vrot.lane.b32.xlu0 %v667_v2, %s806_s15  ;;  %p740_p1 = pneg %p739_p13  ;;  %p746_p8 = por %p745_p5, %p744_p3 }
  0x41   : > { %p747_p10 = pnand %p746_p8, %p740_p1 }
  0xa9   : > { %v669_v8 = vpop.permute.xlu0 %668 }
  0xaa   : > { %v671_v9 = vunpack.i.h.bf16 %v669_v8  ;;  %v670_v10 = vunpack.i.l.bf16 %v669_v8 }
  0xac   : > { %v961_v13 = vsel %vm286_vm0, %v670_v10, %v671_v9  ;;  %v963_v14 = vsel %vm286_vm0, %v671_v9, 0.0  ;;  %vm602_vm0 = vmpackc.low %vm596_vm14, %vm596_vm14 }
  0xad   : > { %v674_v16 = vpop.permute.xlu0 %673  ;;  %v297_v17 = vsel %vm953_vm1, %v961_v13, 0.0  ;;  %v298_v18 = vsel %vm957_vm2, %v963_v14, 0.0  ;;  %v588_v51 = vpack.c.bf16 %v963_v14, %v949_v1  ;;  %v591_v54 = vpack.c.bf16 %v961_v13, %v947_v0 }
  0xae   : > { %v676_v19 = vunpack.i.h.bf16 %v674_v16  ;;  %v675_v20 = vunpack.i.l.bf16 %v674_v16  ;;  %v677_v21 = vpack.i.bf16 %v298_v18, %v297_v17  ;;  %vm370_vm1 = vcmask 588800   ;;  %v424_v16 = vld [vmem:[%s1073_s2] sm:$0x3] }
  0xaf   : > { %vm433_vm2 = vcmask 64512  }
  0xb0   : > { %v979_v23 = vsel %vm277_vm3, 0.0, %v675_v20  ;;  %678 = vrot.lane.b32.xlu1 %v677_v21, %s806_s15  ;;  %v981_v24 = vsel %vm277_vm3, %v675_v20, %v676_v19 }
  0xb1   : > { %v293_v25 = vsel %vm965_vm4, %v979_v23, 0.0  ;;  %v294_v26 = vsel %vm975_vm5, %v981_v24, 0.0  ;;  %v689_v31 = vpop.permute.xlu0 %688 }
  0xb2   : > { %v682_v27 = vpack.i.bf16 %v294_v26, %v293_v25  ;;  %v691_v34 = vunpack.i.h.bf16 %v689_v31  ;;  %v690_v35 = vunpack.i.l.bf16 %v689_v31 }
  0xb4   : > { %683 = vrot.lane.b32.xlu1 %v682_v27, %s806_s15  ;;  %698 = vrot.lane.b32.xlu0 %v682_v27, %s807_s29  ;;  %v342_v43 = vsel %vm340_vm6, %v690_v35, %v691_v34 }
  0xb8   : > { %693 = vrot.lane.b32.xlu1 %v677_v21, %s807_s29  ;;  %367 = vperm.xlu0 %707, %v364_v29  }
  0xbc   : > { %703 = vrot.lane.b32.xlu1 %v667_v2, %s807_s29  ;;  %v353_v2 = vld [vmem:[%s1072_s1] sm:$0xf]  ;;  %s1034_s29 = scalar_lea.hbm %s1076_s5, %s614_s23 }
  0xc0   : > { %430 = vperm.xlu1 %708, %v427_v3  }
 0x122   : > { %v679_v30 = vpop.permute.xlu1 %678 }
 0x123   : > { %v681_v32 = vunpack.i.h.bf16 %v679_v30  ;;  %v680_v33 = vunpack.i.l.bf16 %v679_v30 }
 0x125   : > { %v352_v36 = vsel %vm340_vm6, %v681_v32, 0.0  ;;  %v343_v37 = vsel %vm340_vm6, %v680_v33, %v681_v32 }
 0x126   : > { %v684_v38 = vpop.permute.xlu1 %683  ;;  %v363_v39 = vpack.c.bf16 %v352_v36, %v352_v36  ;;  %v362_v40 = vpack.c.bf16 %v343_v37, %v343_v37  ;;  %v699_v52 = vpop.permute.xlu0 %698 }
 0x127   : > { %v686_v41 = vunpack.i.h.bf16 %v684_v38  ;;  %v685_v42 = vunpack.i.l.bf16 %v684_v38  ;;  %v701_v56 = vunpack.i.h.bf16 %v699_v52  ;;  %v700_v57 = vunpack.i.l.bf16 %v699_v52 }
 0x128   : > { %583 = vmatprep.subr.msk.bf16.mxu0 %vm374_vm7, %v363_v39  ;;  %v376_v44 = vsel %vm374_vm7, %v362_v40, 0 }
 0x129   : > { %v585_v45 = vpack.c.bf16 %v691_v34, %v686_v41  ;;  %388 = vmatpush1.bf16.msra.mxu0 %v376_v44  ;;  %v341_v46 = vsel %vm340_vm6, %v685_v42, %v686_v41  ;;  %v316_v63 = vsel %vm315_vm11, %v700_v57, %v701_v56 }
 0x12a   : > { %v694_v47 = vpop.permute.xlu1 %693  ;;  %v360_v48 = vpack.c.bf16 %v342_v43, %v341_v46 }
 0x12b   : > { %v696_v49 = vunpack.i.h.bf16 %v694_v47  ;;  %v695_v50 = vunpack.i.l.bf16 %v694_v47  ;;  %586 = vmatprep.subr.msk.bf16.mxu0 %vm584_vm8, %v585_v45 }
 0x12d   : > { %v318_v53 = vsel %vm315_vm11, %v695_v50, %v696_v49  ;;  %390 = vmatpush1.bf16.msra.mxu0 %v360_v48  ;;  %v598_v62 = vpack.c.bf16 %v979_v23, %v695_v50 }
 0x12e   : > { %v704_v55 = vpop.permute.xlu1 %703  ;;  %589 = vmatprep.subr.msk.bf16.mxu0 %vm587_vm10, %v588_v51  ;;  %v594_v60 = vpack.c.bf16 %v981_v24, %v318_v53 }
 0x12f   : > { %v706_v58 = vunpack.i.h.bf16 %v704_v55  ;;  %v705_v59 = vunpack.i.l.bf16 %v704_v55 }
 0x131   : > { %592 = vmatpush1.bf16.msk.msra.mxu0 %vm590_vm12, %v591_v54  ;;  %v317_v61 = vsel %vm315_vm11, %v705_v59, %v706_v58  ;;  %v603_v1 = vpack.c.bf16 %v705_v59, %v700_v57 }
 0x132   : > { %595 = vmatprep.subr.msk.bf16.mxu0 %vm593_vm13, %v594_v60  ;;  %v355_v0 = vpack.c.bf16 %v317_v61, %v316_v63 }
 0x133   : > { %v368_v4 = vpop.permute.xlu0 %367 }
 0x135   : > { %599 = vmatpush1.bf16.msk.msra.mxu0 %vm597_vm15, %v598_v62 }
 0x136   : > { %395 = vmatprep.subr.bf16.mxu0 %v355_v0 }
 0x139   : > { %604 = vmatpush1.bf16.msk.msra.mxu0 %vm602_vm0, %v603_v1 }
 0x13b   : > { %v431_v17 = vpop.permute.xlu1 %430 }
 0x13c   : > { %605 = vmatmul.mubr.msk.bf16.vlgmr.msra.gmra.mxu0 %vm370_vm1, %v353_v2 }
 0x1fc   : > { %v415_v5 = vpop.f32.mrf.mxu0 }
 0x1fd   : > { %v416_v6 = vadd.f32 %v415_v5, %v368_v4 }
 0x1fe   : > { %v417_v7 = vpop.f32.mrf.mxu0 }
 0x1ff   : > { %v422_v8 = vmax.f32 %v416_v6, 0.0  ;;  %v418_v9 = vadd.f32 %v417_v7, %v368_v4 }
 0x200   : > { %v419_v10 = vpop.f32.mrf.mxu0 }
 0x201   : > { %v425_v11 = vpack.c.bf16 %v422_v8, %v422_v8  ;;  %v423_v12 = vmax.f32 %v418_v9, 0.0 }
 0x202   : > { %v420_v13 = vpop.f32.mrf.mxu0 }
 0x203   : > { %v426_v14 = vpack.c.bf16 %v423_v12, %v423_v12  ;;  %v438_v15 = vsel %vm374_vm7, %v425_v11, 0 }
 0x205   : > { %606 = vmatprep.subr.msk.bf16.mxu1 %vm374_vm7, %v426_v14 }
 0x206   : > { %458 = vmatpush1.bf16.msra.mxu1 %v438_v15 }
 0x209   : > { %607 = vmatmul.mubr.msk.bf16.vlgmr.msra.gmra.mxu1 %vm433_vm2, %v424_v16 }
 0x2c9   : > { %v477_v18 = vpop.f32.mrf.mxu1 }
 0x2ca   : > { %v478_v20 = vadd.f32 %v477_v18, %v431_v17 }
 0x2cb   : > { %v479_v19 = vpop.f32.mrf.mxu1 }
 0x2cc   : > { %v480_v21 = vadd.f32 %v479_v19, %v431_v17 }
 0x2cd   : > { %v481_v22 = vpop.f32.mrf.mxu1 }
 0x2ce   : > { %v486_v23 = vcombine.low %v478_v20, %v480_v21 }
 0x2cf   : > { %v482_v24 = vpop.f32.mrf.mxu1 }
 0x2d0   : > { %488 = vst [vmem:[%s240_s25] sm:$0xff] %v486_v23 }
 0x2d1   : > { %750 = shalt.err (!%p747_p10)
}
 0x2d2   : > { %s751_s7 = scalar_lea.hbm %s1034_s29, 128  ;;  %s755_s10 = scalar_lea.hbm %s1076_s5, 256 }
 0x2d3   : > { %p752_p2 = scmp.ne.s32.totalorder %s1034_s29, %s751_s7  ;;  %p756_p7 = scmp.lt.s32.totalorder %s1034_s29, %s1076_s5 }
 0x2d4   : > { %p757_p0 = scmp.lt.s32.totalorder %s755_s10, %s751_s7 }
 0x2d5   : > { %p753_p4 = pnand %p752_p2, %p1095_p12 }
 0x2d6   : > { %p758_p6 = por %p757_p0, %p756_p7 }
 0x2d7   : > { %p754_p9 = pneg %p753_p4 }
 0x2d9   : > { %p759_p11 = pnand %p758_p6, %p754_p9 }
 0x2db   : > { %762 = shalt.err (!%p759_p11)
}
 0x2dc   : > { %617 = dma.vmem_to_hbm [thread:$0]  (%p1095_p12), %s505_s12, 128, %s1034_s29, %s490_s16  }
 0x2dd PF: > { %s516_s23 = sand.u32 1, %s789_s18   ;;  %p1096_p13 = scmp.ne.s32.totalorder %s1082_s6, 0 }
 0x2de   : > { %p1097_p1 = scmp.ge.s32.totalorder %s801_s21, 2  ;;  %s517_s25 = scalar_lea.sflag [#allocation4], %s516_s23 }
 0x2e0   : > { %p624_p3 = pnand %p1097_p1, %p1096_p13 }
 0x2e2   : > { %p625_p5 = pneg %p624_p3 }
 0x2e4   : > { %784 = dma.done.wait (%p625_p5), %s517_s25, 128  }
 0x2e5   : > { %786 = vsyncadd (%p625_p5), %s517_s25, 4294967168  ;;  %p18_p8 = scmp.ge.s32.totalorder %s866_s24, 4   ;;  %s1098_s18 = smov %s793_s19 }
 0x2e6   : > { %s1099_s19 = smov %s797_s20  ;;  %s1100_s20 = smov %s878_s27 }
 0x2e7   : > { %s1101_s21 = smov %s866_s24  ;;  %20 = sbr.rel (!%p18_p8) target bundleno = 5 (0x5), region = 85 }
 0x2ec   :  { %522 = vsyncpa [#allocation3], 1 }
 0x2ed   :  { %524 = vsyncpa [#allocation3 + $0x1], 1 }
 0x2ee   :  { %525 = vsyncpa [#allocation4], 1 }
 0x2ef   :  { %527 = vsyncpa [#allocation4 + $0x1], 1 }

</bundles_post_ra>
